<compile_context>
chip_gen: v7x
topology: tpu7x:2x2x1
jax: 0.10.0
libtpu: 0.0.40
codegen_flags: <defaults>
</compile_context>

<pallas_src>
import jax
import jax.numpy as jnp
from jax.experimental import pallas as pl
from jax.experimental.pallas import tpu as pltpu


def _normalize_kernel(scale_ref, bias_ref, x_ref, o_ref):
    # scale_ref / bias_ref: (TM, 1) columns, lane-broadcast by the VPU.
    # x_ref / o_ref: (TM, TN) lane-dense tiles. One broadcast FMA per tile.
    o_ref[...] = (x_ref[...] * scale_ref[...] + bias_ref[...]).astype(o_ref.dtype)


def _choose_tiles(R, L, itemsize):
    """Pick (TM, TN):
      - TN: full row if L <= 2048, else a 2048-wide strip (multiple of 128).
      - TM: grown toward a ~4 MiB/tile budget, aligned to the packed sublane
        tile for the dtype, capped at ~ceil(R/2) so v7x's two TensorCores both
        get row blocks, clamped to R (full dim is always a legal block dim).
    No exact-divisor requirement: the grid uses pl.cdiv and Pallas masks the
    ragged last block."""
    sublane = max(8, 32 // itemsize)          # 8 (f32), 16 (bf16/f16), 32 (int8/fp8)
    TN = L if L <= 2048 else 2048             # lane-dense; 2048 is a multiple of 128

    budget = 4 * 1024 * 1024                  # ~4 MiB per tile
    tm = max(sublane, (budget // max(TN * itemsize, 1)) // sublane * sublane)

    # Keep >= 2 row blocks when R is big enough to split (v7x megacore).
    if R > 2 * sublane:
        half = (R + 1) // 2
        half_aligned = ((half + sublane - 1) // sublane) * sublane
        tm = min(tm, half_aligned)

    TM = R if tm >= R else tm                 # full dim or a sublane-aligned tile
    return TM, TN


def normalize(x, mean, std):
    """x: (N, C, H, W); mean, std: (C,). Returns (x - mean) / std per channel."""
    N, C, H, W = x.shape
    R, L = N * C, H * W
    itemsize = jnp.dtype(x.dtype).itemsize

    # Native low-precision math for 16-bit floats (v6e/v7x bf16 VPU); f32 otherwise.
    if jnp.dtype(x.dtype) in (jnp.dtype(jnp.bfloat16), jnp.dtype(jnp.float16)):
        compute_dtype = x.dtype
    else:
        compute_dtype = jnp.float32

    # Per-channel scale/bias, expanded to one row per (n, c): row r -> channel r % C.
    scale_c = 1.0 / std.astype(jnp.float32)
    bias_c = -mean.astype(jnp.float32) * scale_c
    scale = jnp.tile(scale_c, N).reshape(R, 1).astype(compute_dtype)
    bias = jnp.tile(bias_c, N).reshape(R, 1).astype(compute_dtype)

    x2 = x.reshape(R, L)  # free for contiguous NCHW

    TM, TN = _choose_tiles(R, L, itemsize)
    grid = (pl.cdiv(R, TM), pl.cdiv(L, TN))

    grid_spec = pltpu.PrefetchScalarGridSpec(
        num_scalar_prefetch=0,
        grid=grid,
        in_specs=[
            # scale/bias block index is constant in j -> one DMA per row block.
            pl.BlockSpec((TM, 1), lambda i, j: (i, 0)),
            pl.BlockSpec((TM, 1), lambda i, j: (i, 0)),
            pl.BlockSpec((TM, TN), lambda i, j: (i, j)),
        ],
        out_specs=pl.BlockSpec((TM, TN), lambda i, j: (i, j)),
    )

    cost = pl.CostEstimate(
        flops=2 * R * L,
        transcendentals=0,
        bytes_accessed=2 * R * L * itemsize + 2 * R * jnp.dtype(compute_dtype).itemsize,
    )

    out2 = pl.pallas_call(
        _normalize_kernel,
        out_shape=jax.ShapeDtypeStruct((R, L), x.dtype),
        grid_spec=grid_spec,
        compiler_params=pltpu.CompilerParams(
            # rows parallel (megacore split, disjoint HBM ranges per TC);
            # inner column axis arbitrary so scale/bias blocks are reused.
            dimension_semantics=("parallel", "arbitrary"),
            vmem_limit_bytes=32 * 1024 * 1024,
        ),
        cost_estimate=cost,
        # NOTE: pass input_output_aliases={2: 0} when the caller donates x
        # (halves HBM footprint). Left off: the test reuses x for the reference.
    )(scale, bias, x2)

    return out2.reshape(N, C, H, W)


if __name__ == "__main__":
    # CIFAR-10 style per-channel statistics (deterministic, defined in-script).
    cifar10_mean = jnp.array([0.4914, 0.4822, 0.4465], dtype=jnp.float32)
    cifar10_std = jnp.array([0.2471, 0.2435, 0.2616], dtype=jnp.float32)

    # Small NCHW input: batch=2, channels=3 (RGB), spatial=16x16.
    key = jax.random.PRNGKey(0)
    x = jax.random.uniform(key, (2, 3, 16, 16), dtype=jnp.float32)

    out = normalize(x, cifar10_mean, cifar10_std)
    out = jax.block_until_ready(out)

    # Reference check against plain-JAX broadcasting semantics (matches PyTorch).
    ref = (x - cifar10_mean[None, :, None, None]) / cifar10_std[None, :, None, None]
    assert out.shape == x.shape and out.dtype == x.dtype
    assert jnp.allclose(out, ref, atol=1e-5, rtol=1e-5)

    print("KERNEL_OK")
</pallas_src>

<mosaic_0001>
module attributes {stable_mosaic.version = 11 : i64} {
  func.func @_normalize_kernel(%arg0: i32, %arg1: i32, %arg2: memref<6x1xf32, #tpu.memory_space<vmem>>, %arg3: memref<6x1xf32, #tpu.memory_space<vmem>>, %arg4: memref<6x256xf32, #tpu.memory_space<vmem>>, %arg5: memref<6x256xf32, #tpu.memory_space<vmem>>) attributes {dimension_semantics = [#tpu.dimension_semantics<parallel>, #tpu.dimension_semantics<arbitrary>], iteration_bounds = array<i64: 1, 1>, scalar_prefetch = 0 : i64, scratch_operands = 0 : i64, tpu.core_type = #tpu.core_type<tc>, window_params = [{transform_indices = @transform_0, window_bounds = array<i64: 6, 1>}, {transform_indices = @transform_1, window_bounds = array<i64: 6, 1>}, {transform_indices = @transform_2, window_bounds = array<i64: 6, 256>}, {transform_indices = @transform_3, window_bounds = array<i64: 6, 256>}]} {
    %c0 = arith.constant 0 : index
    %c0_0 = arith.constant 0 : index
    %0 = vector.load %arg4[%c0, %c0_0] : memref<6x256xf32, #tpu.memory_space<vmem>>, vector<6x256xf32>
    %c0_1 = arith.constant 0 : index
    %c0_2 = arith.constant 0 : index
    %1 = vector.load %arg2[%c0_1, %c0_2] : memref<6x1xf32, #tpu.memory_space<vmem>>, vector<6x1xf32>
    %2 = vector.broadcast %1 : vector<6x1xf32> to vector<6x256xf32>
    %3 = arith.mulf %0, %2 : vector<6x256xf32>
    %c0_3 = arith.constant 0 : index
    %c0_4 = arith.constant 0 : index
    %4 = vector.load %arg3[%c0_3, %c0_4] : memref<6x1xf32, #tpu.memory_space<vmem>>, vector<6x1xf32>
    %5 = vector.broadcast %4 : vector<6x1xf32> to vector<6x256xf32>
    %6 = arith.addf %3, %5 : vector<6x256xf32>
    %c0_5 = arith.constant 0 : index
    %c0_6 = arith.constant 0 : index
    %7 = vector.load %arg5[%c0_5, %c0_6] : memref<6x256xf32, #tpu.memory_space<vmem>>, vector<6x256xf32>
    tpu.vector_store %arg5[%c0_5, %c0_6], %6 {strides = array<i32>} : memref<6x256xf32, #tpu.memory_space<vmem>>, vector<6x256xf32>,
    return
  }
  func.func @transform_0(%arg0: i32, %arg1: i32) -> (i32, i32) {
    %c0_i32 = arith.constant 0 : i32
    %c0_i32_0 = arith.constant 0 : i32
    return %arg0, %c0_i32 : i32, i32
  }
  func.func @transform_1(%arg0: i32, %arg1: i32) -> (i32, i32) {
    %c0_i32 = arith.constant 0 : i32
    %c0_i32_0 = arith.constant 0 : i32
    return %arg0, %c0_i32 : i32, i32
  }
  func.func @transform_2(%arg0: i32, %arg1: i32) -> (i32, i32) {
    %c0_i32 = arith.constant 0 : i32
    return %arg0, %arg1 : i32, i32
  }
  func.func @transform_3(%arg0: i32, %arg1: i32) -> (i32, i32) {
    %c0_i32 = arith.constant 0 : i32
    return %arg0, %arg1 : i32, i32
  }
}

</mosaic_0001>

<bundles_post_ra>
// kernel: tpu_custom_call.1
= control target key start
LH: loop header
LB: loop body
LE: loop exit
PB: predicated region body
PF: predicated region fallthrough
CT: control target
= control target key end

     0   :  { %v76_v1 = vmov 0   ;;  %s122_s0 = inlined_call_operand.vmem [shape: f32[6,1], index: 0, kind: input, shape index: {}]   ;;  %s123_s1 = inlined_call_operand.vmem [shape: f32[6,1], index: 1, kind: input, shape index: {}]   ;;  %s124_s2 = inlined_call_operand.vmem [shape: f32[6,256], index: 2, kind: input, shape index: {}]   ;;  %s125_s3 = inlined_call_operand.hbm [shape: f32[6,256], index: 3, kind: output, shape index: {}]  }
   0x1   :  { %v17_v0 = vld [vmem:[%s122_s0] sm:$0x3f]  ;;  %51 = vset.pattern.permute.xlu0 %v76_v1 }
   0x2   :  { %8 = vsyncpa [#allocation3], 0  ;;  %20 = vperm.xlu0 %51, %v17_v0   ;;  %v25_v2 = vld [vmem:[%s123_s1] sm:$0x3f]  ;;  %v16_v5 = vld [vmem:[%s124_s2 + $0x8] sm:$0x3f] }
   0x3   :  { %v15_v4 = vld [vmem:[%s124_s2] sm:$0x3f]  ;;  %s77_s20 = smov [#allocation2]  }
   0x4   :  { %s41_s0 = sshll.u32 %s77_s20, 4  ;;  %s42_s0 = int_to_ptr.vmem [resolvable:$true] %s41_s0 }
   0x5   :  { %s52_s1 = scalar_lea.vmem %s42_s0, 256  ;;  %p57_p1 = scmp.lt.s32.totalorder %s42_s0, %s42_s0 }
   0x6   :  { %28 = vperm.xlu0 %51, %v25_v2   ;;  %p53_p0 = scmp.ne.s32.totalorder %s42_s0, %s52_s1  ;;  %p58_p2 = scmp.lt.s32.totalorder %s52_s1, %s52_s1 }
   0x8   :  { %p59_p3 = por %p58_p2, %p57_p1 }
   0xa   :  { %p60_p4 = pnand %p59_p3, %p53_p0 }
  0x81   :  { %v21_v3 = vpop.permute.xlu0 %20 }
  0x82   :  { %v23_v6 = vmul.f32 %v21_v3, %v15_v4  ;;  %v24_v7 = vmul.f32 %v21_v3, %v16_v5 }
  0x85   :  { %v29_v8 = vpop.permute.xlu0 %28 }
  0x86   :  { %v31_v9 = vadd.f32 %v29_v8, %v23_v6  ;;  %v32_v10 = vadd.f32 %v29_v8, %v24_v7 }
  0x88   :  { %33 = vst [vmem:[#allocation2] sm:$0x3f] %v31_v9  ;;  %34 = vst [vmem:[#allocation2 + $0x8] sm:$0x3f] %v32_v10 }
  0x89   :  { %63 = shalt.err (!%p60_p4)
}
  0x8a   :  { %s64_s2 = scalar_lea.hbm %s125_s3, 256 }
  0x8b   :  { %p65_p5 = scmp.ne.s32.totalorder %s125_s3, %s64_s2  ;;  %p68_p6 = scmp.lt.u32.totalorder %s64_s2, %s125_s3 }
  0x8d   :  { %p70_p7 = pnand %p68_p6, %p65_p5 }
  0x8f   :  { %73 = shalt.err (!%p70_p7)
}
  0x90   :  { %44 = dma.vmem_to_hbm [thread:$0]  %s42_s0, 256, %s125_s3, [#allocation3]  }
  0x91   :  { %74 = dma.done.wait [#allocation3], 256  }
  0x92   :  { %75 = vsyncadd [#allocation3], 4294967040 }
  0x93   :  { %48 = vsyncpa [#allocation3], 1 }

</bundles_post_ra>
